<compile_context>
chip_gen: v7x
topology: tpu7x:2x2x1
jax: 0.10.0
libtpu: 0.0.40
codegen_flags: <defaults>
</compile_context>

<pallas_src>
import functools
import math

import jax
import jax.numpy as jnp
from jax.experimental import pallas as pl
from jax.experimental.pallas import tpu as pltpu


_TARGET_STEP_BYTES = 8 * 1024 * 1024   # x-in + out bytes per grid step (x2 when double-buffered)
_VMEM_LIMIT_BYTES = 32 * 1024 * 1024   # safe on v5e/v6e (128 MiB phys) and v7x (64 MiB phys)
_MAX_TILE_ROWS = 16384


# ---------------------------------------------------------------------------
# Kernels
# ---------------------------------------------------------------------------

def _layernorm_rows_kernel(x_ref, a_ref, b_ref, o_ref, *, eps, inv_nm1):
    """Layout (row_tile, F): features on the 128-lane axis (use for F >= 128)."""
    x = x_ref[...].astype(jnp.float32)                       # (TM, F)
    mean = jnp.mean(x, axis=-1, keepdims=True)               # (TM, 1)
    d = x - mean
    var = jnp.sum(d * d, axis=-1, keepdims=True) * inv_nm1   # unbiased (N-1)
    # One reciprocal per row instead of a (TM, F) divide.
    # approx=True would push this to the EUP but costs a few ULPs; keep exact.
    inv = pl.reciprocal(jnp.sqrt(var) + eps, approx=False)   # (TM, 1)
    a = a_ref[...].astype(jnp.float32)                       # (1, F)
    b = b_ref[...].astype(jnp.float32)                       # (1, F)
    o_ref[...] = (a * (d * inv) + b).astype(o_ref.dtype)


def _layernorm_cols_kernel(x_ref, a_ref, b_ref, o_ref, *, eps, inv_nm1):
    """Layout (F, row_tile): rows on the 128-lane axis -> lane-dense for small F."""
    x = x_ref[...].astype(jnp.float32)                       # (F, TN)
    mean = jnp.mean(x, axis=0, keepdims=True)                # (1, TN)
    d = x - mean
    var = jnp.sum(d * d, axis=0, keepdims=True) * inv_nm1    # unbiased (N-1)
    inv = pl.reciprocal(jnp.sqrt(var) + eps, approx=False)   # (1, TN)
    a = a_ref[...].astype(jnp.float32)                       # (F, 1)
    b = b_ref[...].astype(jnp.float32)                       # (F, 1)
    o_ref[...] = (a * (d * inv) + b).astype(o_ref.dtype)


# ---------------------------------------------------------------------------
# Wrapper
# ---------------------------------------------------------------------------

def _choose_tile(rows, features, in_bytes, out_bytes, align):
    """Largest aligned row tile with ~_TARGET_STEP_BYTES of (in+out) per step."""
    per_row = features * (in_bytes + out_bytes)
    t = _TARGET_STEP_BYTES // max(per_row, 1)
    t = min(t, _MAX_TILE_ROWS, pl.cdiv(rows, align) * align)
    t = max(align, (t // align) * align)
    return int(t)


def layer_norm(x, a_2, b_2, eps=1e-6, *, out_dtype=jnp.float32):
    """LayerNorm over the last axis of x.

    Default out_dtype=float32 matches the module's `.float()` semantics; pass a
    narrower dtype (e.g. bf16) to cut writeback bytes if downstream allows it.
    """
    features = x.shape[-1]
    # NOTE: features == 1 gives division by zero (N-1 == 0), same as torch.std.
    lead_shape = x.shape[:-1]
    rows = math.prod(lead_shape) if lead_shape else 1

    x2 = jnp.reshape(x, (rows, features))
    in_bytes = x2.dtype.itemsize
    out_bytes = jnp.dtype(out_dtype).itemsize

    eps = float(eps)                       # static Python floats (no captured
    inv_nm1 = 1.0 / float(features - 1)    # f32[] constants in the kernel)

    compiler_params = pltpu.CompilerParams(
        dimension_semantics=("parallel",),
        vmem_limit_bytes=_VMEM_LIMIT_BYTES,
    )

    if features >= 128:
        # Natural layout: features on lanes (already lane-friendly).
        tm = _choose_tile(rows, features, in_bytes, out_bytes, align=8)
        rows_pad = pl.cdiv(rows, tm) * tm
        if rows_pad != rows:
            x2 = jnp.pad(x2, ((0, rows_pad - rows), (0, 0)))
        a2 = jnp.reshape(a_2, (1, features))
        b2 = jnp.reshape(b_2, (1, features))

        out = pl.pallas_call(
            functools.partial(_layernorm_rows_kernel, eps=eps, inv_nm1=inv_nm1),
            out_shape=jax.ShapeDtypeStruct((rows_pad, features), out_dtype),
            grid_spec=pltpu.PrefetchScalarGridSpec(
                num_scalar_prefetch=0,
                grid=(rows_pad // tm,),
                in_specs=[
                    pl.BlockSpec((tm, features), lambda i: (i, 0)),
                    pl.BlockSpec((1, features), lambda i: (0, 0)),
                    pl.BlockSpec((1, features), lambda i: (0, 0)),
                ],
                out_specs=pl.BlockSpec((tm, features), lambda i: (i, 0)),
            ),
            compiler_params=compiler_params,
        )(x2, a2, b2)
        out = out[:rows]
    else:
        # Small-F layout: put rows on the 128-lane axis so vregs are fully used
        # and stores are unmasked. The wrapper transposes are layout plumbing.
        tn = _choose_tile(rows, features, in_bytes, out_bytes, align=128)
        rows_pad = pl.cdiv(rows, tn) * tn
        if rows_pad != rows:
            x2 = jnp.pad(x2, ((0, rows_pad - rows), (0, 0)))
        xt = jnp.transpose(x2)                               # (F, rows_pad)
        a2 = jnp.reshape(a_2, (features, 1))
        b2 = jnp.reshape(b_2, (features, 1))

        out_t = pl.pallas_call(
            functools.partial(_layernorm_cols_kernel, eps=eps, inv_nm1=inv_nm1),
            out_shape=jax.ShapeDtypeStruct((features, rows_pad), out_dtype),
            grid_spec=pltpu.PrefetchScalarGridSpec(
                num_scalar_prefetch=0,
                grid=(rows_pad // tn,),
                in_specs=[
                    pl.BlockSpec((features, tn), lambda i: (0, i)),
                    pl.BlockSpec((features, 1), lambda i: (0, 0)),
                    pl.BlockSpec((features, 1), lambda i: (0, 0)),
                ],
                out_specs=pl.BlockSpec((features, tn), lambda i: (0, i)),
            ),
            compiler_params=compiler_params,
        )(xt, a2, b2)
        out = jnp.transpose(out_t)[:rows]                    # (rows, F)

    return jnp.reshape(out, lead_shape + (features,))


if __name__ == "__main__":
    key = jax.random.PRNGKey(0)
    batch, seq, hidden = 2, 8, 32      # features = hidden = 32

    x = jax.random.normal(key, (batch, seq, hidden), dtype=jnp.float32)

    # deterministic parameter init, matching nn.Parameter(torch.ones/zeros(features))
    a_2 = jnp.ones((hidden,), dtype=jnp.float32)
    b_2 = jnp.zeros((hidden,), dtype=jnp.float32)

    out = layer_norm(x, a_2, b_2, eps=1e-6)
    out = jax.block_until_ready(out)

    # sanity check against a pure-JAX reference (unbiased std, eps added to std)
    mean = jnp.mean(x, axis=-1, keepdims=True)
    std = jnp.sqrt(jnp.sum((x - mean) ** 2, axis=-1, keepdims=True) / (hidden - 1))
    ref = a_2 * (x - mean) / (std + 1e-6) + b_2
    assert jnp.max(jnp.abs(out - ref)) < 1e-4, "mismatch vs reference"

    print("KERNEL_OK")
</pallas_src>

<mosaic_0001>
module attributes {stable_mosaic.version = 11 : i64} {
  func.func @_layernorm_cols_kernel(%arg0: i32, %arg1: memref<32x128xf32, #tpu.memory_space<vmem>>, %arg2: memref<32x1xf32, #tpu.memory_space<vmem>>, %arg3: memref<32x1xf32, #tpu.memory_space<vmem>>, %arg4: memref<32x128xf32, #tpu.memory_space<vmem>>) attributes {dimension_semantics = [#tpu.dimension_semantics<parallel>], iteration_bounds = array<i64: 1>, scalar_prefetch = 0 : i64, scratch_operands = 0 : i64, tpu.core_type = #tpu.core_type<tc>, window_params = [{transform_indices = @transform_0, window_bounds = array<i64: 32, 128>}, {pipeline_mode = #tpu.pipeline_mode<synchronous>, transform_indices = @transform_1, window_bounds = array<i64: 32, 1>}, {pipeline_mode = #tpu.pipeline_mode<synchronous>, transform_indices = @transform_2, window_bounds = array<i64: 32, 1>}, {transform_indices = @transform_3, window_bounds = array<i64: 32, 128>}]} {
    %c0 = arith.constant 0 : index
    %c0_0 = arith.constant 0 : index
    %0 = vector.load %arg1[%c0, %c0_0] : memref<32x128xf32, #tpu.memory_space<vmem>>, vector<32x128xf32>
    %cst = arith.constant dense<0.000000e+00> : vector<128xf32>
    %1 = vector.multi_reduction <add>, %0, %cst [0] : vector<32x128xf32> to vector<128xf32>
    %2 = vector.shape_cast %1 : vector<128xf32> to vector<1x128xf32>
    %cst_1 = arith.constant 3.200000e+01 : f32
    %3 = vector.broadcast %cst_1 : f32 to vector<1x128xf32>
    %4 = arith.divf %2, %3 : vector<1x128xf32>
    %5 = vector.broadcast %4 : vector<1x128xf32> to vector<32x128xf32>
    %6 = arith.subf %0, %5 : vector<32x128xf32>
    %7 = arith.mulf %6, %6 : vector<32x128xf32>
    %cst_2 = arith.constant dense<0.000000e+00> : vector<128xf32>
    %8 = vector.multi_reduction <add>, %7, %cst_2 [0] : vector<32x128xf32> to vector<128xf32>
    %9 = vector.shape_cast %8 : vector<128xf32> to vector<1x128xf32>
    %cst_3 = arith.constant 0.0322580636 : f32
    %10 = vector.broadcast %cst_3 : f32 to vector<1x128xf32>
    %11 = arith.mulf %9, %10 : vector<1x128xf32>
    %12 = math.sqrt %11 : vector<1x128xf32>
    %cst_4 = arith.constant 9.99999997E-7 : f32
    %13 = vector.broadcast %cst_4 : f32 to vector<1x128xf32>
    %14 = arith.addf %12, %13 : vector<1x128xf32>
    %15 = tpu.reciprocal %14 : vector<1x128xf32> -> vector<1x128xf32>
    %c0_5 = arith.constant 0 : index
    %c0_6 = arith.constant 0 : index
    %16 = vector.load %arg2[%c0_5, %c0_6] : memref<32x1xf32, #tpu.memory_space<vmem>>, vector<32x1xf32>
    %c0_7 = arith.constant 0 : index
    %c0_8 = arith.constant 0 : index
    %17 = vector.load %arg3[%c0_7, %c0_8] : memref<32x1xf32, #tpu.memory_space<vmem>>, vector<32x1xf32>
    %18 = vector.broadcast %15 : vector<1x128xf32> to vector<32x128xf32>
    %19 = arith.mulf %6, %18 : vector<32x128xf32>
    %20 = vector.broadcast %16 : vector<32x1xf32> to vector<32x128xf32>
    %21 = arith.mulf %20, %19 : vector<32x128xf32>
    %22 = vector.broadcast %17 : vector<32x1xf32> to vector<32x128xf32>
    %23 = arith.addf %21, %22 : vector<32x128xf32>
    %c0_9 = arith.constant 0 : index
    %c0_10 = arith.constant 0 : index
    %24 = vector.load %arg4[%c0_9, %c0_10] : memref<32x128xf32, #tpu.memory_space<vmem>>, vector<32x128xf32>
    tpu.vector_store %arg4[%c0_9, %c0_10], %23 {strides = array<i32>} : memref<32x128xf32, #tpu.memory_space<vmem>>, vector<32x128xf32>,
    return
  }
  func.func @transform_0(%arg0: i32) -> (i32, i32) {
    %c0_i32 = arith.constant 0 : i32
    %c0_i32_0 = arith.constant 0 : i32
    return %c0_i32, %arg0 : i32, i32
  }
  func.func @transform_1(%arg0: i32) -> (i32, i32) {
    %c0_i32 = arith.constant 0 : i32
    %c0_i32_0 = arith.constant 0 : i32
    %c0_i32_1 = arith.constant 0 : i32
    return %c0_i32, %c0_i32_0 : i32, i32
  }
  func.func @transform_2(%arg0: i32) -> (i32, i32) {
    %c0_i32 = arith.constant 0 : i32
    %c0_i32_0 = arith.constant 0 : i32
    %c0_i32_1 = arith.constant 0 : i32
    return %c0_i32, %c0_i32_0 : i32, i32
  }
  func.func @transform_3(%arg0: i32) -> (i32, i32) {
    %c0_i32 = arith.constant 0 : i32
    %c0_i32_0 = arith.constant 0 : i32
    return %c0_i32, %arg0 : i32, i32
  }
}

</mosaic_0001>

<bundles_post_ra>
// kernel: tpu_custom_call.1
= control target key start
LH: loop header
LB: loop body
LE: loop exit
PB: predicated region body
PF: predicated region fallthrough
CT: control target
= control target key end

     0   :  { %v171_v2 = vmov 0   ;;  %s243_s0 = inlined_call_operand.vmem [shape: f32[32,128], index: 0, kind: input, shape index: {}]   ;;  %s244_s1 = inlined_call_operand.vmem [shape: f32[32,1], index: 1, kind: input, shape index: {}]   ;;  %s245_s2 = inlined_call_operand.vmem [shape: f32[32,1], index: 2, kind: input, shape index: {}]   ;;  %s246_s3 = inlined_call_operand.hbm [shape: f32[32,128], index: 3, kind: output, shape index: {}]  }
   0x1   :  { %v59_v0 = vld [vmem:[%s244_s1 + $0x10] sm:$0xff]  ;;  %v57_v1 = vld [vmem:[%s244_s1] sm:$0xff]  ;;  %142 = vset.pattern.permute.xlu1 %v171_v2  ;;  %141 = vset.pattern.permute.xlu0 %v171_v2  ;;  %v60_v4 = vld [vmem:[%s244_s1 + $0x18] sm:$0xff] }
   0x2   :  { %81 = vperm.xlu1 %142, %v59_v0   ;;  %71 = vperm.xlu0 %141, %v57_v1   ;;  %v15_v3 = vld [vmem:[%s243_s0] sm:$0xff]  ;;  %v58_v5 = vld [vmem:[%s244_s1 + $0x8] sm:$0xff] }
   0x3   :  { %v16_v6 = vld [vmem:[%s243_s0 + $0x8] sm:$0xff] }
   0x4   :  { %v19_v7 = vadd.f32 %v16_v6, %v15_v3 }
   0x5   :  { %8 = vsyncpa [#allocation3], 0  ;;  %v17_v8 = vld [vmem:[%s243_s0 + $0x10] sm:$0xff]  ;;  %v62_v9 = vld [vmem:[%s245_s2 + $0x8] sm:$0xff] }
   0x6   :  { %86 = vperm.xlu1 %142, %v60_v4   ;;  %76 = vperm.xlu0 %141, %v58_v5   ;;  %v61_v10 = vld [vmem:[%s245_s2] sm:$0xff]  ;;  %v20_v11 = vadd.f32 %v19_v7, %v17_v8  ;;  %v18_v12 = vld [vmem:[%s243_s0 + $0x18] sm:$0xff]  ;;  %v63_v14 = vld [vmem:[%s245_s2 + $0x10] sm:$0xff]  ;;  %s172_s0 = smov [#allocation2]  }
   0x7   :  { %v64_v13 = vld [vmem:[%s245_s2 + $0x18] sm:$0xff]  ;;  %s126_s2 = sshll.u32 %s172_s0, 4  ;;  %s127_s2 = int_to_ptr.vmem [resolvable:$true] %s126_s2 }
   0x8   :  { %v21_v15 = vadd.f32 %v20_v11, %v18_v12  ;;  %s147_s8 = scalar_lea.vmem %s127_s2, 512  ;;  %p152_p1 = scmp.lt.s32.totalorder %s127_s2, %s127_s2 }
   0x9   :  { %p148_p0 = scmp.ne.s32.totalorder %s127_s2, %s147_s8  ;;  %p153_p2 = scmp.lt.s32.totalorder %s147_s8, %s147_s8 }
   0xa   :  { %100 = vperm.xlu1 %142, %v62_v9   ;;  %95 = vperm.xlu0 %141, %v61_v10   ;;  %v22_v16 = vrot.slane %v21_v15, 4 }
   0xb   :  { %p154_p3 = por %p153_p2, %p152_p1 }
   0xc   :  { %v23_v17 = vadd.f32 %v22_v16, %v21_v15 }
   0xd   :  { %p155_p4 = pnand %p154_p3, %p148_p0 }
   0xe   :  { %110 = vperm.xlu1 %142, %v64_v13   ;;  %105 = vperm.xlu0 %141, %v63_v14   ;;  %v24_v18 = vrot.slane %v23_v17, 2 }
  0x10   :  { %v25_v19 = vadd.f32 %v24_v18, %v23_v17 }
  0x12   :  { %v26_v20 = vrot.slane %v25_v19, 1 }
  0x14   :  { %v27_v21 = vadd.f32 %v26_v20, %v25_v19 }
  0x16   :  { %v29_v22 = vmul.f32 0.03125, %v27_v21 }
  0x18   :  { %v30_v23 = vsub.f32 %v15_v3, %v29_v22  ;;  %v31_v24 = vsub.f32 %v16_v6, %v29_v22  ;;  %v32_v25 = vsub.f32 %v17_v8, %v29_v22  ;;  %v33_v28 = vsub.f32 %v18_v12, %v29_v22 }
  0x1a   :  { %v34_v26 = vmul.f32 %v30_v23, %v30_v23  ;;  %v35_v27 = vmul.f32 %v31_v24, %v31_v24  ;;  %v36_v29 = vmul.f32 %v32_v25, %v32_v25  ;;  %v37_v31 = vmul.f32 %v33_v28, %v33_v28 }
  0x1c   :  { %v38_v30 = vadd.f32 %v35_v27, %v34_v26 }
  0x1e   :  { %v39_v32 = vadd.f32 %v38_v30, %v36_v29 }
  0x20   :  { %v40_v33 = vadd.f32 %v39_v32, %v37_v31 }
  0x22   :  { %v41_v34 = vrot.slane %v40_v33, 4 }
  0x24   :  { %v42_v35 = vadd.f32 %v41_v34, %v40_v33 }
  0x26   :  { %v43_v36 = vrot.slane %v42_v35, 2 }
  0x28   :  { %v44_v37 = vadd.f32 %v43_v36, %v42_v35 }
  0x2a   :  { %v45_v38 = vrot.slane %v44_v37, 1 }
  0x2c   :  { %v46_v39 = vadd.f32 %v45_v38, %v44_v37 }
  0x2e   :  { %v47_v40 = vmul.f32 0.032258064, %v46_v39 }
  0x30   :  { %143 = vrsqrt.f32 %v47_v40  ;;  %vm50_vm0 = vcmp.eq.f32.partialorder %v47_v40, inf  ;;  %v53_v43 = vand.u32 2147483648, %v47_v40  ;;  %vm52_vm1 = vcmp.eq.f32.partialorder %v47_v40, 0.0 }
  0x3a   :  { %v144_v41 = vpop.eup %143 }
  0x3b   :  { %v49_v42 = vmul.f32 %v144_v41, %v47_v40 }
  0x3d   :  { %v51_v44 = vsel %vm50_vm0, %v47_v40, %v49_v42 }
  0x3e   :  { %v54_v45 = vsel %vm52_vm1, %v53_v43, %v51_v44 }
  0x3f   :  { %v55_v46 = vadd.f32 1e-06, %v54_v45 }
  0x41   :  { %145 = vrcp.f32 %v55_v46 }
  0x4b   :  { %v146_v47 = vpop.eup %145 }
  0x4c   :  { %v65_v50 = vmul.f32 %v146_v47, %v30_v23  ;;  %v66_v51 = vmul.f32 %v146_v47, %v31_v24  ;;  %v67_v54 = vmul.f32 %v146_v47, %v32_v25  ;;  %v68_v56 = vmul.f32 %v146_v47, %v33_v28 }
  0x81   :  { %v82_v48 = vpop.permute.xlu1 %81  ;;  %v72_v49 = vpop.permute.xlu0 %71 }
  0x82   :  { %v89_v55 = vmul.f32 %v72_v49, %v65_v50  ;;  %v91_v62 = vmul.f32 %v82_v48, %v67_v54 }
  0x85   :  { %v87_v52 = vpop.permute.xlu1 %86  ;;  %v77_v53 = vpop.permute.xlu0 %76 }
  0x86   :  { %v90_v57 = vmul.f32 %v77_v53, %v66_v51  ;;  %v92_v63 = vmul.f32 %v87_v52, %v68_v56 }
  0x89   :  { %v101_v58 = vpop.permute.xlu1 %100  ;;  %v96_v59 = vpop.permute.xlu0 %95 }
  0x8a   :  { %v114_v60 = vadd.f32 %v101_v58, %v90_v57  ;;  %v113_v61 = vadd.f32 %v96_v59, %v89_v55 }
  0x8c   :  { %118 = vst [vmem:[#allocation2 + $0x8] sm:$0xff] %v114_v60  ;;  %117 = vst [vmem:[#allocation2] sm:$0xff] %v113_v61 }
  0x8d   :  { %v111_v0 = vpop.permute.xlu1 %110  ;;  %v106_v1 = vpop.permute.xlu0 %105 }
  0x8e   :  { %v116_v2 = vadd.f32 %v111_v0, %v92_v63  ;;  %v115_v3 = vadd.f32 %v106_v1, %v91_v62 }
  0x90   :  { %120 = vst [vmem:[#allocation2 + $0x18] sm:$0xff] %v116_v2  ;;  %119 = vst [vmem:[#allocation2 + $0x10] sm:$0xff] %v115_v3 }
  0x91   :  { %158 = shalt.err (!%p155_p4)
}
  0x92   :  { %s159_s11 = scalar_lea.hbm %s246_s3, 512 }
  0x93   :  { %p160_p5 = scmp.ne.s32.totalorder %s246_s3, %s159_s11  ;;  %p163_p6 = scmp.lt.u32.totalorder %s159_s11, %s246_s3 }
  0x95   :  { %p165_p7 = pnand %p163_p6, %p160_p5 }
  0x97   :  { %168 = shalt.err (!%p165_p7)
}
  0x98   :  { %s173_s16 = smov 128   ;;  %s174_s17 = smov 8  }
  0x99   :  { %132 = dma.vmem_to_hbm [thread:$0]  %s127_s2, 512, %s246_s3, [#allocation3], %s173_s16, %s173_s16, %s174_s17  }
  0x9a   :  { %169 = dma.done.wait [#allocation3], 512  }
  0x9b   :  { %170 = vsyncadd [#allocation3], 4294966784 }
  0x9c   :  { %136 = vsyncpa [#allocation3], 1 }

</bundles_post_ra>
